<compile_context>
chip_gen: v7x
topology: tpu7x:2x2x1
jax: 0.10.0
libtpu: 0.0.40
codegen_flags: <defaults>
</compile_context>

<pallas_src>
import math

import jax
import jax.numpy as jnp
from jax.experimental import pallas as pl
from jax.experimental.pallas import tpu as pltpu


def _relu_kernel(x_ref, o_ref):
    # Elementwise ReLU on the current (tile_rows, tile_cols) block -> pure VPU work.
    o_ref[...] = jnp.maximum(x_ref[...], 0)


def _choose_layout(total):
    """Pick a lane-dense (rows, cols, tile_rows, tile_cols) layout.

    Preference order:
      1. (16, total//16) tiled as (8, cols): two sublane-legal blocks, one per
         grid step (shardable across v7x's two TensorCores), ~full lane density.
      2. (8, total//8) with the lane dim split into two 128-multiple tiles, to
         keep >= 2 grid steps when rows can't be split.
      3. (8, total//8) as a single full-extent block (grid collapses to 1).
    Returns None if total is not a multiple of 8 (caller falls back to one
    full-extent block).
    """
    if total % 16 == 0 and (total // 16) >= 128:
        cols = total // 16
        return 16, cols, 8, cols
    if total % 8 == 0:
        cols = total // 8
        if cols % 256 == 0:
            return 8, cols, 8, cols // 2
        return 8, cols, 8, cols
    return None


def relu_pallas(x):
    """ReLU via a Pallas TPU kernel. x: any-shape float array (NCHW here)."""
    orig_shape = x.shape
    total = math.prod(orig_shape)

    layout = _choose_layout(total)
    if layout is None:
        # TODO(synk): tiny / odd-sized inputs fall back to one full-extent block
        # (grid=(1, 1)); correct but not sharded across v7x TensorCores.
        layout = (1, total, 1, total)
    rows, cols, tile_rows, tile_cols = layout

    # Contiguous row-major reinterpretation: elementwise op + reshape-back is exact.
    x2d = x.reshape(rows, cols)
    grid = (rows // tile_rows, cols // tile_cols)

    out2d = pl.pallas_call(
        _relu_kernel,
        out_shape=jax.ShapeDtypeStruct((rows, cols), x.dtype),
        grid=grid,
        in_specs=[pl.BlockSpec((tile_rows, tile_cols), lambda i, j: (i, j))],
        out_specs=pl.BlockSpec((tile_rows, tile_cols), lambda i, j: (i, j)),
        input_output_aliases={0: 0},
        compiler_params=pltpu.CompilerParams(
            dimension_semantics=("parallel", "parallel"),
        ),
    )(x2d)

    return out2d.reshape(orig_shape)


if __name__ == "__main__":
    key = jax.random.PRNGKey(0)
    # Shape implied by the module's forward: [1, 1232, 14, 14]
    x187 = jax.random.normal(key, (1, 1232, 14, 14), dtype=jnp.float32)

    relu_jit = jax.jit(relu_pallas)
    out = relu_jit(x187)
    out = jax.block_until_ready(out)

    # Sanity check against plain JAX reference.
    ref = jnp.maximum(x187, 0.0)
    assert out.shape == x187.shape
    assert out.dtype == x187.dtype
    assert jnp.allclose(out, ref), "mismatch vs reference ReLU"

    print("KERNEL_OK")
</pallas_src>

<mosaic_0001>
module attributes {stable_mosaic.version = 11 : i64} {
  func.func @_relu_kernel(%arg0: i32, %arg1: i32, %arg2: memref<8x15092xf32, #tpu.memory_space<vmem>>, %arg3: memref<8x15092xf32, #tpu.memory_space<vmem>>) attributes {dimension_semantics = [#tpu.dimension_semantics<parallel>, #tpu.dimension_semantics<parallel>], iteration_bounds = array<i64: 2, 1>, scalar_prefetch = 0 : i64, scratch_operands = 0 : i64, tpu.core_type = #tpu.core_type<tc>, window_params = [{transform_indices = @transform_0, window_bounds = array<i64: 8, 15092>}, {transform_indices = @transform_1, window_bounds = array<i64: 8, 15092>}]} {
    %c0 = arith.constant 0 : index
    %c0_0 = arith.constant 0 : index
    %0 = vector.load %arg2[%c0, %c0_0] : memref<8x15092xf32, #tpu.memory_space<vmem>>, vector<8x15092xf32>
    %cst = arith.constant 0.000000e+00 : f32
    %1 = vector.broadcast %cst : f32 to vector<8x15092xf32>
    %2 = arith.maximumf %0, %1 : vector<8x15092xf32>
    %c0_1 = arith.constant 0 : index
    %c0_2 = arith.constant 0 : index
    %3 = vector.load %arg3[%c0_1, %c0_2] : memref<8x15092xf32, #tpu.memory_space<vmem>>, vector<8x15092xf32>
    tpu.vector_store %arg3[%c0_1, %c0_2], %2 {strides = array<i32>} : memref<8x15092xf32, #tpu.memory_space<vmem>>, vector<8x15092xf32>,
    return
  }
  func.func @transform_0(%arg0: i32, %arg1: i32) -> (i32, i32) {
    %c0_i32 = arith.constant 0 : i32
    return %arg0, %arg1 : i32, i32
  }
  func.func @transform_1(%arg0: i32, %arg1: i32) -> (i32, i32) {
    %c0_i32 = arith.constant 0 : i32
    return %arg0, %arg1 : i32, i32
  }
}

</mosaic_0001>

<bundles_post_ra>
// kernel: relu_pallas.1
= control target key start
LH: loop header
LB: loop body
LE: loop exit
PB: predicated region body
PF: predicated region fallthrough
CT: control target
= control target key end

     0   :  { %s666_s6 = smov 0   ;;  %s668_s7 = smov 0   ;;  %s1535_s0 = inlined_call_operand.vmem [shape: f32[16,15092], index: 0, kind: input, shape index: {}, may-alias: {0,1}]   ;;  %s1536_s1 = inlined_call_operand.vmem [shape: f32[16,15092], index: 1, kind: output, shape index: {}, may-alias: {0,1}]  }
   0x1   :  { %s670_s8 = smov 0  }
   0x2 LB: > { %s23_s9 = sadd.s32 1, %s650_s7  ;;  %p602_p0 = scmp.ge.s32.totalorder %s654_s8, 1  ;;  %s654_s8 = sphi %s670_s8, %s11_s8   ;;  %s650_s7 = sphi %s668_s7, %s1834_s7   ;;  %s646_s6 = sphi %s666_s6, %s1833_s6  }
   0x3   : > { %p25_p1 = scmp.ge.s32.totalorder %s23_s9, 2  ;;  %p108_p2 = scmp.lt.s32.totalorder %s654_s8, 3 }
   0x5   : > { %s1836_s9 = smov (%p25_p1, %s23_s9), 0  ;;  %p109_p3 = pnand %p602_p0, %p108_p2 }
   0x7   : > { %112 = sbr.rel (%p109_p3) target bundleno = 128 (0x80), region = 24 }
   0xe   : > { %p137_p4 = scmp.lt.s32.totalorder %s646_s6, 1  ;;  %vm509_vm0 = vcmask 949248  }
  0x10   : > { %s1838_s6 = smov (!%p137_p4, %s646_s6), 1 }
  0x11   : > { %s607_s10 = smul.u32 944, %s1838_s6 }
  0x13   : > { %s692_s13 = scalar_lea.vmem %s1535_s0, %s607_s10  ;;  %s1140_s16 = scalar_lea.vmem %s1536_s1, %s607_s10 }
  0x14   : > { %v695_v0 = vld [vmem:[%s692_s13] sm:$0xff]  ;;  %v698_v1 = vld [vmem:[%s692_s13 + $0x8] sm:$0xff]  ;;  %v701_v2 = vld [vmem:[%s692_s13 + $0x10] sm:$0xff] }
  0x15   : > { %v704_v3 = vld [vmem:[%s692_s13 + $0x18] sm:$0xff]  ;;  %v707_v4 = vld [vmem:[%s692_s13 + $0x20] sm:$0xff]  ;;  %v710_v5 = vld [vmem:[%s692_s13 + $0x28] sm:$0xff] }
  0x16   : > { %v716_v9 = vld [vmem:[%s692_s13 + $0x30] sm:$0xff]  ;;  %v719_v10 = vld [vmem:[%s692_s13 + $0x38] sm:$0xff]  ;;  %v722_v11 = vld [vmem:[%s692_s13 + $0x40] sm:$0xff] }
  0x17   : > { %v728_v15 = vld [vmem:[%s692_s13 + $0x48] sm:$0xff]  ;;  %v731_v16 = vld [vmem:[%s692_s13 + $0x50] sm:$0xff]  ;;  %v734_v17 = vld [vmem:[%s692_s13 + $0x58] sm:$0xff] }
  0x18   : > { %v740_v21 = vld [vmem:[%s692_s13 + $0x60] sm:$0xff]  ;;  %v743_v22 = vld [vmem:[%s692_s13 + $0x68] sm:$0xff]  ;;  %v746_v23 = vld [vmem:[%s692_s13 + $0x70] sm:$0xff] }
  0x19   : > { %v752_v27 = vld [vmem:[%s692_s13 + $0x78] sm:$0xff]  ;;  %v755_v28 = vld [vmem:[%s692_s13 + $0x80] sm:$0xff]  ;;  %v758_v29 = vld [vmem:[%s692_s13 + $0x88] sm:$0xff] }
  0x1a   : > { %v764_v33 = vld [vmem:[%s692_s13 + $0x90] sm:$0xff]  ;;  %v767_v34 = vld [vmem:[%s692_s13 + $0x98] sm:$0xff]  ;;  %v770_v35 = vld [vmem:[%s692_s13 + $0xa0] sm:$0xff] }
  0x1b   : > { %v776_v39 = vld [vmem:[%s692_s13 + $0xa8] sm:$0xff]  ;;  %v779_v40 = vld [vmem:[%s692_s13 + $0xb0] sm:$0xff]  ;;  %v782_v41 = vld [vmem:[%s692_s13 + $0xb8] sm:$0xff] }
  0x1c   : > { %v788_v45 = vld [vmem:[%s692_s13 + $0xc0] sm:$0xff]  ;;  %v791_v46 = vld [vmem:[%s692_s13 + $0xc8] sm:$0xff]  ;;  %v794_v47 = vld [vmem:[%s692_s13 + $0xd0] sm:$0xff] }
  0x1d   : > { %v800_v51 = vld [vmem:[%s692_s13 + $0xd8] sm:$0xff]  ;;  %v803_v52 = vld [vmem:[%s692_s13 + $0xe0] sm:$0xff]  ;;  %v806_v53 = vld [vmem:[%s692_s13 + $0xe8] sm:$0xff] }
  0x1e   : > { %v812_v57 = vld [vmem:[%s692_s13 + $0xf0] sm:$0xff]  ;;  %v815_v58 = vld [vmem:[%s692_s13 + $0xf8] sm:$0xff]  ;;  %v818_v59 = vld [vmem:[%s692_s13 + $0x100] sm:$0xff] }
  0x1f   : > { %v824_v63 = vld [vmem:[%s692_s13 + $0x108] sm:$0xff]  ;;  %v827_v55 = vld [vmem:[%s692_s13 + $0x110] sm:$0xff]  ;;  %v830_v56 = vld [vmem:[%s692_s13 + $0x118] sm:$0xff] }
  0x20   : > { %v836_v49 = vld [vmem:[%s692_s13 + $0x120] sm:$0xff]  ;;  %v839_v61 = vld [vmem:[%s692_s13 + $0x128] sm:$0xff]  ;;  %v842_v62 = vld [vmem:[%s692_s13 + $0x130] sm:$0xff] }
  0x21   : > { %v848_v43 = vld [vmem:[%s692_s13 + $0x138] sm:$0xff]  ;;  %v851_v50 = vld [vmem:[%s692_s13 + $0x140] sm:$0xff]  ;;  %v854_v60 = vld [vmem:[%s692_s13 + $0x148] sm:$0xff] }
  0x22   : > { %v860_v37 = vld [vmem:[%s692_s13 + $0x150] sm:$0xff]  ;;  %v863_v44 = vld [vmem:[%s692_s13 + $0x158] sm:$0xff]  ;;  %v866_v54 = vld [vmem:[%s692_s13 + $0x160] sm:$0xff] }
  0x23   : > { %v872_v31 = vld [vmem:[%s692_s13 + $0x168] sm:$0xff]  ;;  %v875_v38 = vld [vmem:[%s692_s13 + $0x170] sm:$0xff]  ;;  %v878_v48 = vld [vmem:[%s692_s13 + $0x178] sm:$0xff] }
  0x24   : > { %v884_v25 = vld [vmem:[%s692_s13 + $0x180] sm:$0xff]  ;;  %v887_v32 = vld [vmem:[%s692_s13 + $0x188] sm:$0xff]  ;;  %v890_v42 = vld [vmem:[%s692_s13 + $0x190] sm:$0xff] }
  0x25   : > { %1597 = vst [vmem:[#allocation2_spill] sm:$0xff] %v890_v42  ;;  %v896_v19 = vld [vmem:[%s692_s13 + $0x198] sm:$0xff]  ;;  %v899_v26 = vld [vmem:[%s692_s13 + $0x1a0] sm:$0xff]  ;;  %v902_v36 = vld [vmem:[%s692_s13 + $0x1a8] sm:$0xff] }
  0x26   : > { %1598 = vst [vmem:[#allocation3_spill] sm:$0xff] %v896_v19  ;;  %1599 = vst [vmem:[#allocation4_spill] sm:$0xff] %v899_v26  ;;  %v908_v13 = vld [vmem:[%s692_s13 + $0x1b0] sm:$0xff]  ;;  %v911_v20 = vld [vmem:[%s692_s13 + $0x1b8] sm:$0xff] }
  0x27   : > { %1600 = vst [vmem:[#allocation5_spill] sm:$0xff] %v902_v36  ;;  %1601 = vst [vmem:[#allocation6_spill] sm:$0xff] %v908_v13  ;;  %v914_v30 = vld [vmem:[%s692_s13 + $0x1c0] sm:$0xff]  ;;  %v920_v7 = vld [vmem:[%s692_s13 + $0x1c8] sm:$0xff] }
  0x28   : > { %1602 = vst [vmem:[#allocation7_spill] sm:$0xff] %v911_v20  ;;  %1603 = vst [vmem:[#allocation8_spill] sm:$0xff] %v914_v30  ;;  %v923_v14 = vld [vmem:[%s692_s13 + $0x1d0] sm:$0xff]  ;;  %v926_v24 = vld [vmem:[%s692_s13 + $0x1d8] sm:$0xff] }
  0x29   : > { %1604 = vst [vmem:[#allocation9_spill] sm:$0xff] %v920_v7  ;;  %1605 = vst [vmem:[#allocation10_spill] sm:$0xff] %v923_v14  ;;  %v932_v19 = vld [vmem:[%s692_s13 + $0x1e0] sm:$0xff]  ;;  %v935_v8 = vld [vmem:[%s692_s13 + $0x1e8] sm:$0xff] }
  0x2a   : > { %1606 = vst [vmem:[#allocation11_spill] sm:$0xff] %v926_v24  ;;  %1607 = vst [vmem:[#allocation12_spill] sm:$0xff] %v932_v19  ;;  %v938_v18 = vld [vmem:[%s692_s13 + $0x1f0] sm:$0xff]  ;;  %v944_v13 = vld [vmem:[%s692_s13 + $0x1f8] sm:$0xff] }
  0x2b   : > { %1608 = vst [vmem:[#allocation13_spill] sm:$0xff] %v935_v8  ;;  %1609 = vst [vmem:[#allocation14_spill] sm:$0xff] %v938_v18  ;;  %v947_v42 = vld [vmem:[%s692_s13 + $0x200] sm:$0xff]  ;;  %v950_v12 = vld [vmem:[%s692_s13 + $0x208] sm:$0xff] }
  0x2c   : > { %1610 = vst [vmem:[#allocation15_spill] sm:$0xff] %v944_v13  ;;  %1611 = vst [vmem:[#allocation16_spill] sm:$0xff] %v947_v42  ;;  %v956_v7 = vld [vmem:[%s692_s13 + $0x210] sm:$0xff]  ;;  %v959_v26 = vld [vmem:[%s692_s13 + $0x218] sm:$0xff] }
  0x2d   : > { %1612 = vst [vmem:[#allocation17_spill] sm:$0xff] %v950_v12  ;;  %1613 = vst [vmem:[#allocation18_spill] sm:$0xff] %v956_v7  ;;  %v962_v6 = vld [vmem:[%s692_s13 + $0x220] sm:$0xff]  ;;  %v968_v19 = vld [vmem:[%s692_s13 + $0x228] sm:$0xff] }
  0x2e   : > { %1614 = vst [vmem:[#allocation19_spill] sm:$0xff] %v959_v26  ;;  %1615 = vst [vmem:[#allocation20_spill] sm:$0xff] %v962_v6  ;;  %v971_v20 = vld [vmem:[%s692_s13 + $0x230] sm:$0xff]  ;;  %v974_v36 = vld [vmem:[%s692_s13 + $0x238] sm:$0xff] }
  0x2f   : > { %1616 = vst [vmem:[#allocation21_spill] sm:$0xff] %v968_v19  ;;  %1617 = vst [vmem:[#allocation22_spill] sm:$0xff] %v971_v20  ;;  %v980_v13 = vld [vmem:[%s692_s13 + $0x240] sm:$0xff]  ;;  %v983_v14 = vld [vmem:[%s692_s13 + $0x248] sm:$0xff] }
  0x30   : > { %1618 = vst [vmem:[#allocation23_spill] sm:$0xff] %v974_v36  ;;  %1619 = vst [vmem:[#allocation24_spill] sm:$0xff] %v980_v13  ;;  %v986_v30 = vld [vmem:[%s692_s13 + $0x250] sm:$0xff]  ;;  %v992_v7 = vld [vmem:[%s692_s13 + $0x258] sm:$0xff] }
  0x31   : > { %1620 = vst [vmem:[#allocation25_spill] sm:$0xff] %v983_v14  ;;  %1621 = vst [vmem:[#allocation26_spill] sm:$0xff] %v986_v30  ;;  %v995_v8 = vld [vmem:[%s692_s13 + $0x260] sm:$0xff]  ;;  %v998_v24 = vld [vmem:[%s692_s13 + $0x268] sm:$0xff] }
  0x32   : > { %1622 = vst [vmem:[#allocation27_spill] sm:$0xff] %v992_v7  ;;  %1623 = vst [vmem:[#allocation28_spill] sm:$0xff] %v995_v8  ;;  %v1004_v19 = vld [vmem:[%s692_s13 + $0x270] sm:$0xff]  ;;  %v1007_v42 = vld [vmem:[%s692_s13 + $0x278] sm:$0xff] }
  0x33   : > { %1624 = vst [vmem:[#allocation29_spill] sm:$0xff] %v998_v24  ;;  %1625 = vst [vmem:[#allocation30_spill] sm:$0xff] %v1004_v19  ;;  %v1010_v18 = vld [vmem:[%s692_s13 + $0x280] sm:$0xff]  ;;  %v1016_v13 = vld [vmem:[%s692_s13 + $0x288] sm:$0xff] }
  0x34   : > { %1626 = vst [vmem:[#allocation31_spill] sm:$0xff] %v1007_v42  ;;  %1627 = vst [vmem:[#allocation32_spill] sm:$0xff] %v1010_v18  ;;  %v1019_v26 = vld [vmem:[%s692_s13 + $0x290] sm:$0xff]  ;;  %v1022_v12 = vld [vmem:[%s692_s13 + $0x298] sm:$0xff] }
  0x35   : > { %1628 = vst [vmem:[#allocation33_spill] sm:$0xff] %v1016_v13  ;;  %1629 = vst [vmem:[#allocation34_spill] sm:$0xff] %v1019_v26  ;;  %v1028_v7 = vld [vmem:[%s692_s13 + $0x2a0] sm:$0xff]  ;;  %v1031_v20 = vld [vmem:[%s692_s13 + $0x2a8] sm:$0xff] }
  0x36   : > { %1630 = vst [vmem:[#allocation35_spill] sm:$0xff] %v1022_v12  ;;  %1631 = vst [vmem:[#allocation36_spill] sm:$0xff] %v1028_v7  ;;  %v1034_v6 = vld [vmem:[%s692_s13 + $0x2b0] sm:$0xff]  ;;  %v1040_v19 = vld [vmem:[%s692_s13 + $0x2b8] sm:$0xff] }
  0x37   : > { %1632 = vst [vmem:[#allocation37_spill] sm:$0xff] %v1031_v20  ;;  %1633 = vst [vmem:[#allocation38_spill] sm:$0xff] %v1034_v6  ;;  %v1043_v14 = vld [vmem:[%s692_s13 + $0x2c0] sm:$0xff]  ;;  %v1046_v36 = vld [vmem:[%s692_s13 + $0x2c8] sm:$0xff] }
  0x38   : > { %1634 = vst [vmem:[#allocation39_spill] sm:$0xff] %v1040_v19  ;;  %1635 = vst [vmem:[#allocation40_spill] sm:$0xff] %v1043_v14  ;;  %v1052_v13 = vld [vmem:[%s692_s13 + $0x2d0] sm:$0xff]  ;;  %v1055_v8 = vld [vmem:[%s692_s13 + $0x2d8] sm:$0xff] }
  0x39   : > { %1636 = vst [vmem:[#allocation41_spill] sm:$0xff] %v1046_v36  ;;  %1637 = vst [vmem:[#allocation42_spill] sm:$0xff] %v1052_v13  ;;  %v1058_v30 = vld [vmem:[%s692_s13 + $0x2e0] sm:$0xff]  ;;  %v1064_v7 = vld [vmem:[%s692_s13 + $0x2e8] sm:$0xff] }
  0x3a   : > { %1638 = vst [vmem:[#allocation43_spill] sm:$0xff] %v1055_v8  ;;  %1639 = vst [vmem:[#allocation44_spill] sm:$0xff] %v1058_v30  ;;  %v1067_v42 = vld [vmem:[%s692_s13 + $0x2f0] sm:$0xff]  ;;  %v1070_v24 = vld [vmem:[%s692_s13 + $0x2f8] sm:$0xff] }
  0x3b   : > { %1640 = vst [vmem:[#allocation45_spill] sm:$0xff] %v1064_v7  ;;  %1641 = vst [vmem:[#allocation46_spill] sm:$0xff] %v1067_v42  ;;  %v1076_v19 = vld [vmem:[%s692_s13 + $0x300] sm:$0xff]  ;;  %v1079_v26 = vld [vmem:[%s692_s13 + $0x308] sm:$0xff] }
  0x3c   : > { %1642 = vst [vmem:[#allocation47_spill] sm:$0xff] %v1070_v24  ;;  %1643 = vst [vmem:[#allocation48_spill] sm:$0xff] %v1076_v19  ;;  %v1082_v18 = vld [vmem:[%s692_s13 + $0x310] sm:$0xff]  ;;  %v1088_v13 = vld [vmem:[%s692_s13 + $0x318] sm:$0xff] }
  0x3d   : > { %1644 = vst [vmem:[#allocation49_spill] sm:$0xff] %v1079_v26  ;;  %1645 = vst [vmem:[#allocation50_spill] sm:$0xff] %v1082_v18  ;;  %v1091_v20 = vld [vmem:[%s692_s13 + $0x320] sm:$0xff]  ;;  %v1094_v12 = vld [vmem:[%s692_s13 + $0x328] sm:$0xff] }
  0x3e   : > { %1646 = vst [vmem:[#allocation51_spill] sm:$0xff] %v1088_v13  ;;  %1647 = vst [vmem:[#allocation52_spill] sm:$0xff] %v1091_v20  ;;  %v1100_v7 = vld [vmem:[%s692_s13 + $0x330] sm:$0xff]  ;;  %v1103_v14 = vld [vmem:[%s692_s13 + $0x338] sm:$0xff]  ;;  %v1658_v13 = vmax.f32 %v698_v1, 0.0  ;;  %v1663_v1 = vmax.f32 %v716_v9, 0.0 }
  0x3f   : > { %1648 = vst [vmem:[#allocation53_spill] sm:$0xff] %v1094_v12  ;;  %1649 = vst [vmem:[#allocation54_spill] sm:$0xff] %v1103_v14  ;;  %v1106_v6 = vld [vmem:[%s692_s13 + $0x340] sm:$0xff]  ;;  %v1112_v8 = vld [vmem:[%s692_s13 + $0x348] sm:$0xff]  ;;  %v1657_v14 = vmax.f32 %v695_v0, 0.0  ;;  %v1659_v12 = vmax.f32 %v701_v2, 0.0 }
  0x40   : > { %1650 = vst [vmem:[#allocation55_spill] sm:$0xff] %v1106_v6  ;;  %1651 = vst [vmem:[#allocation56_spill] sm:$0xff] %v1112_v8  ;;  %v1115_v26 = vld [vmem:[%s692_s13 + $0x350] sm:$0xff]  ;;  %v1118_v36 = vld [vmem:[%s692_s13 + $0x358] sm:$0xff]  ;;  %v1662_v0 = vmax.f32 %v710_v5, 0.0  ;;  %v1664_v2 = vmax.f32 %v719_v10, 0.0 }
  0x41   : > { %1652 = vst [vmem:[#allocation57_spill] sm:$0xff] %v1115_v26  ;;  %1653 = vst [vmem:[#allocation58_spill] sm:$0xff] %v1118_v36  ;;  %v1124_v42 = vld [vmem:[%s692_s13 + $0x360] sm:$0xff]  ;;  %v1127_v20 = vld [vmem:[%s692_s13 + $0x368] sm:$0xff]  ;;  %v1667_v5 = vmax.f32 %v731_v16, 0.0  ;;  %v1668_v9 = vmax.f32 %v734_v17, 0.0 }
  0x42   : > { %1654 = vst [vmem:[#allocation59_spill] sm:$0xff] %v1124_v42  ;;  %1655 = vst [vmem:[#allocation60_spill] sm:$0xff] %v1127_v20  ;;  %v1130_v30 = vld [vmem:[%s692_s13 + $0x370] sm:$0xff]  ;;  %v1143_v24 = vld [vmem:[%s692_s13 + $0x378] sm:$0xff]  ;;  %v1661_v42 = vmax.f32 %v707_v4, 0.0  ;;  %v1666_v4 = vmax.f32 %v728_v15, 0.0 }
  0x43   : > { %1656 = vst [vmem:[#allocation61_spill] sm:$0xff] %v1130_v30  ;;  %v1146_v19 = vld [vmem:[%s692_s13 + $0x380] sm:$0xff]  ;;  %v1149_v6 = vld [vmem:[%s692_s13 + $0x388] sm:$0xff]  ;;  %v1155_v36 = vld [vmem:[%s692_s13 + $0x390] sm:$0xff]  ;;  %v1660_v30 = vmax.f32 %v704_v3, 0.0  ;;  %v1665_v3 = vmax.f32 %v722_v11, 0.0 }
  0x44   : > { %v1158_v26 = vld [vmem:[%s692_s13 + $0x398] sm:$0xff]  ;;  %v1161_v8 = vld [vmem:[%s692_s13 + $0x3a0] sm:$0xff]  ;;  %v1167_v18 = vld [vmem:[%s692_s13 + $0x3a8] sm:$0xff]  ;;  %v1669_v10 = vmax.f32 %v740_v21, 0.0  ;;  %v1670_v11 = vmax.f32 %v743_v22, 0.0  ;;  %v1674_v15 = vmax.f32 %v758_v29, 0.0 }
  0x45   : > { %v389_v20 = vmax.f32 %v1158_v26, 0.0  ;;  %392 = vst [vmem:[%s1140_s16] sm:$0xff] %v1657_v14  ;;  %393 = vst [vmem:[%s1140_s16 + $0x8] sm:$0xff] %v1658_v13  ;;  %v1672_v13 = vmax.f32 %v752_v27, 0.0  ;;  %v1673_v14 = vmax.f32 %v755_v28, 0.0  ;;  %v1675_v16 = vmax.f32 %v764_v33, 0.0 }
  0x46   : > { %394 = vst [vmem:[%s1140_s16 + $0x10] sm:$0xff] %v1659_v12  ;;  %395 = vst [vmem:[%s1140_s16 + $0x18] sm:$0xff] %v1660_v30  ;;  %v1671_v12 = vmax.f32 %v746_v23, 0.0  ;;  %v1676_v17 = vmax.f32 %v767_v34, 0.0  ;;  %v1677_v21 = vmax.f32 %v770_v35, 0.0  ;;  %v1678_v22 = vmax.f32 %v776_v39, 0.0 }
  0x47   : > { %396 = vst [vmem:[%s1140_s16 + $0x20] sm:$0xff] %v1661_v42  ;;  %397 = vst [vmem:[%s1140_s16 + $0x28] sm:$0xff] %v1662_v0  ;;  %v1679_v23 = vmax.f32 %v779_v40, 0.0  ;;  %v1680_v27 = vmax.f32 %v782_v41, 0.0  ;;  %v1681_v28 = vmax.f32 %v788_v45, 0.0  ;;  %v1682_v29 = vmax.f32 %v791_v46, 0.0 }
  0x48   : > { %398 = vst [vmem:[%s1140_s16 + $0x30] sm:$0xff] %v1663_v1  ;;  %399 = vst [vmem:[%s1140_s16 + $0x38] sm:$0xff] %v1664_v2  ;;  %v1683_v30 = vmax.f32 %v794_v47, 0.0  ;;  %v1684_v33 = vmax.f32 %v800_v51, 0.0  ;;  %v1685_v34 = vmax.f32 %v803_v52, 0.0  ;;  %v1686_v35 = vmax.f32 %v806_v53, 0.0 }
  0x49   : > { %400 = vst [vmem:[%s1140_s16 + $0x40] sm:$0xff] %v1665_v3  ;;  %401 = vst [vmem:[%s1140_s16 + $0x48] sm:$0xff] %v1666_v4  ;;  %v1687_v39 = vmax.f32 %v812_v57, 0.0  ;;  %v1688_v40 = vmax.f32 %v815_v58, 0.0  ;;  %v1689_v41 = vmax.f32 %v818_v59, 0.0  ;;  %v1690_v42 = vmax.f32 %v824_v63, 0.0 }
  0x4a   : > { %402 = vst [vmem:[%s1140_s16 + $0x50] sm:$0xff] %v1667_v5  ;;  %403 = vst [vmem:[%s1140_s16 + $0x58] sm:$0xff] %v1668_v9  ;;  %v1691_v45 = vmax.f32 %v827_v55, 0.0  ;;  %v1692_v46 = vmax.f32 %v830_v56, 0.0  ;;  %v1693_v47 = vmax.f32 %v836_v49, 0.0  ;;  %v1694_v51 = vmax.f32 %v839_v61, 0.0 }
  0x4b   : > { %404 = vst [vmem:[%s1140_s16 + $0x60] sm:$0xff] %v1669_v10  ;;  %405 = vst [vmem:[%s1140_s16 + $0x68] sm:$0xff] %v1670_v11  ;;  %v1695_v52 = vmax.f32 %v842_v62, 0.0  ;;  %v1696_v53 = vmax.f32 %v848_v43, 0.0  ;;  %v1697_v55 = vmax.f32 %v851_v50, 0.0  ;;  %v1698_v49 = vmax.f32 %v854_v60, 0.0 }
  0x4c   : > { %406 = vst [vmem:[%s1140_s16 + $0x70] sm:$0xff] %v1671_v12  ;;  %407 = vst [vmem:[%s1140_s16 + $0x78] sm:$0xff] %v1672_v13  ;;  %v1699_v56 = vmax.f32 %v860_v37, 0.0  ;;  %v1700_v57 = vmax.f32 %v863_v44, 0.0  ;;  %v1701_v43 = vmax.f32 %v866_v54, 0.0  ;;  %v1702_v50 = vmax.f32 %v872_v31, 0.0 }
  0x4d   : > { %408 = vst [vmem:[%s1140_s16 + $0x80] sm:$0xff] %v1673_v14  ;;  %409 = vst [vmem:[%s1140_s16 + $0x88] sm:$0xff] %v1674_v15  ;;  %v1703_v58 = vmax.f32 %v875_v38, 0.0  ;;  %v1704_v37 = vmax.f32 %v878_v48, 0.0  ;;  %v1705_v44 = vmax.f32 %v884_v25, 0.0  ;;  %v1706_v54 = vmax.f32 %v887_v32, 0.0 }
  0x4e   : > { %410 = vst [vmem:[%s1140_s16 + $0x90] sm:$0xff] %v1675_v16  ;;  %411 = vst [vmem:[%s1140_s16 + $0x98] sm:$0xff] %v1676_v17  ;;  %v1707_v59 = vld [vmem:[#allocation2_spill] sm:$0xff]  ;;  %v1709_v60 = vld [vmem:[#allocation3_spill] sm:$0xff] }
  0x4f   : > { %412 = vst [vmem:[%s1140_s16 + $0xa0] sm:$0xff] %v1677_v21  ;;  %413 = vst [vmem:[%s1140_s16 + $0xa8] sm:$0xff] %v1678_v22  ;;  %v1708_v31 = vmax.f32 %v1707_v59, 0.0  ;;  %v1710_v38 = vmax.f32 %v1709_v60, 0.0  ;;  %v1711_v61 = vld [vmem:[#allocation4_spill] sm:$0xff]  ;;  %v1713_v62 = vld [vmem:[#allocation5_spill] sm:$0xff] }
  0x50   : > { %414 = vst [vmem:[%s1140_s16 + $0xb0] sm:$0xff] %v1679_v23  ;;  %415 = vst [vmem:[%s1140_s16 + $0xb8] sm:$0xff] %v1680_v27  ;;  %v1712_v48 = vmax.f32 %v1711_v61, 0.0  ;;  %v1714_v25 = vmax.f32 %v1713_v62, 0.0  ;;  %v1715_v63 = vld [vmem:[#allocation6_spill] sm:$0xff]  ;;  %v1717_v0 = vld [vmem:[#allocation7_spill] sm:$0xff] }
  0x51   : > { %416 = vst [vmem:[%s1140_s16 + $0xc0] sm:$0xff] %v1681_v28  ;;  %417 = vst [vmem:[%s1140_s16 + $0xc8] sm:$0xff] %v1682_v29  ;;  %v1716_v32 = vmax.f32 %v1715_v63, 0.0  ;;  %v1718_v1 = vmax.f32 %v1717_v0, 0.0  ;;  %v1719_v2 = vld [vmem:[#allocation8_spill] sm:$0xff]  ;;  %v1721_v4 = vld [vmem:[#allocation9_spill] sm:$0xff] }
  0x52   : > { %418 = vst [vmem:[%s1140_s16 + $0xd0] sm:$0xff] %v1683_v30  ;;  %419 = vst [vmem:[%s1140_s16 + $0xd8] sm:$0xff] %v1684_v33  ;;  %v1720_v3 = vmax.f32 %v1719_v2, 0.0  ;;  %v1722_v5 = vmax.f32 %v1721_v4, 0.0  ;;  %v1723_v9 = vld [vmem:[#allocation10_spill] sm:$0xff]  ;;  %v1725_v11 = vld [vmem:[#allocation11_spill] sm:$0xff] }
  0x53   : > { %420 = vst [vmem:[%s1140_s16 + $0xe0] sm:$0xff] %v1685_v34  ;;  %421 = vst [vmem:[%s1140_s16 + $0xe8] sm:$0xff] %v1686_v35  ;;  %v1724_v10 = vmax.f32 %v1723_v9, 0.0  ;;  %v1726_v12 = vmax.f32 %v1725_v11, 0.0  ;;  %v1727_v13 = vld [vmem:[#allocation12_spill] sm:$0xff]  ;;  %v1729_v15 = vld [vmem:[#allocation13_spill] sm:$0xff] }
  0x54   : > { %422 = vst [vmem:[%s1140_s16 + $0xf0] sm:$0xff] %v1687_v39  ;;  %423 = vst [vmem:[%s1140_s16 + $0xf8] sm:$0xff] %v1688_v40  ;;  %v1728_v14 = vmax.f32 %v1727_v13, 0.0  ;;  %v1730_v16 = vmax.f32 %v1729_v15, 0.0  ;;  %v1731_v17 = vld [vmem:[#allocation14_spill] sm:$0xff]  ;;  %v1733_v22 = vld [vmem:[#allocation15_spill] sm:$0xff] }
  0x55   : > { %424 = vst [vmem:[%s1140_s16 + $0x100] sm:$0xff] %v1689_v41  ;;  %425 = vst [vmem:[%s1140_s16 + $0x108] sm:$0xff] %v1690_v42  ;;  %v1732_v21 = vmax.f32 %v1731_v17, 0.0  ;;  %v1734_v23 = vmax.f32 %v1733_v22, 0.0  ;;  %v1735_v27 = vld [vmem:[#allocation16_spill] sm:$0xff]  ;;  %v1737_v29 = vld [vmem:[#allocation17_spill] sm:$0xff] }
  0x56   : > { %426 = vst [vmem:[%s1140_s16 + $0x110] sm:$0xff] %v1691_v45  ;;  %427 = vst [vmem:[%s1140_s16 + $0x118] sm:$0xff] %v1692_v46  ;;  %v1736_v28 = vmax.f32 %v1735_v27, 0.0  ;;  %v1738_v30 = vmax.f32 %v1737_v29, 0.0  ;;  %v1739_v33 = vld [vmem:[#allocation18_spill] sm:$0xff]  ;;  %v1741_v35 = vld [vmem:[#allocation19_spill] sm:$0xff] }
  0x57   : > { %428 = vst [vmem:[%s1140_s16 + $0x120] sm:$0xff] %v1693_v47  ;;  %429 = vst [vmem:[%s1140_s16 + $0x128] sm:$0xff] %v1694_v51  ;;  %v1740_v34 = vmax.f32 %v1739_v33, 0.0  ;;  %v1742_v39 = vmax.f32 %v1741_v35, 0.0  ;;  %v1743_v40 = vld [vmem:[#allocation20_spill] sm:$0xff]  ;;  %v1745_v42 = vld [vmem:[#allocation21_spill] sm:$0xff] }
  0x58   : > { %430 = vst [vmem:[%s1140_s16 + $0x130] sm:$0xff] %v1695_v52  ;;  %431 = vst [vmem:[%s1140_s16 + $0x138] sm:$0xff] %v1696_v53  ;;  %v1744_v41 = vmax.f32 %v1743_v40, 0.0  ;;  %v1746_v45 = vmax.f32 %v1745_v42, 0.0  ;;  %v1747_v46 = vld [vmem:[#allocation22_spill] sm:$0xff]  ;;  %v1749_v51 = vld [vmem:[#allocation23_spill] sm:$0xff] }
  0x59   : > { %432 = vst [vmem:[%s1140_s16 + $0x140] sm:$0xff] %v1697_v55  ;;  %433 = vst [vmem:[%s1140_s16 + $0x148] sm:$0xff] %v1698_v49  ;;  %v1748_v47 = vmax.f32 %v1747_v46, 0.0  ;;  %v1750_v52 = vmax.f32 %v1749_v51, 0.0  ;;  %v1751_v53 = vld [vmem:[#allocation24_spill] sm:$0xff]  ;;  %v1753_v49 = vld [vmem:[#allocation25_spill] sm:$0xff] }
  0x5a   : > { %434 = vst [vmem:[%s1140_s16 + $0x150] sm:$0xff] %v1699_v56  ;;  %435 = vst [vmem:[%s1140_s16 + $0x158] sm:$0xff] %v1700_v57  ;;  %v1752_v55 = vmax.f32 %v1751_v53, 0.0  ;;  %v1754_v56 = vmax.f32 %v1753_v49, 0.0  ;;  %v1755_v57 = vld [vmem:[#allocation26_spill] sm:$0xff] }
  0x5b   : > { %436 = vst [vmem:[%s1140_s16 + $0x160] sm:$0xff] %v1701_v43  ;;  %437 = vst [vmem:[%s1140_s16 + $0x168] sm:$0xff] %v1702_v50  ;;  %v1756_v43 = vmax.f32 %v1755_v57, 0.0  ;;  %v1757_v50 = vld [vmem:[#allocation27_spill] sm:$0xff] }
  0x5c   : > { %438 = vst [vmem:[%s1140_s16 + $0x170] sm:$0xff] %v1703_v58  ;;  %439 = vst [vmem:[%s1140_s16 + $0x178] sm:$0xff] %v1704_v37  ;;  %v1758_v58 = vmax.f32 %v1757_v50, 0.0  ;;  %v1759_v37 = vld [vmem:[#allocation28_spill] sm:$0xff]  ;;  %v1812_v50 = vld [vmem:[#allocation54_spill] sm:$0xff] }
  0x5d   : > { %440 = vst [vmem:[%s1140_s16 + $0x180] sm:$0xff] %v1705_v44  ;;  %441 = vst [vmem:[%s1140_s16 + $0x188] sm:$0xff] %v1706_v54  ;;  %v1760_v44 = vmax.f32 %v1759_v37, 0.0  ;;  %v1761_v54 = vld [vmem:[#allocation29_spill] sm:$0xff]  ;;  %v1814_v37 = vld [vmem:[#allocation55_spill] sm:$0xff] }
  0x5e   : > { %442 = vst [vmem:[%s1140_s16 + $0x190] sm:$0xff] %v1708_v31  ;;  %443 = vst [vmem:[%s1140_s16 + $0x198] sm:$0xff] %v1710_v38  ;;  %v1762_v59 = vmax.f32 %v1761_v54, 0.0  ;;  %v1763_v31 = vld [vmem:[#allocation30_spill] sm:$0xff]  ;;  %v1765_v38 = vld [vmem:[#allocation31_spill] sm:$0xff] }
  0x5f   : > { %444 = vst [vmem:[%s1140_s16 + $0x1a0] sm:$0xff] %v1712_v48  ;;  %445 = vst [vmem:[%s1140_s16 + $0x1a8] sm:$0xff] %v1714_v25  ;;  %v1764_v60 = vmax.f32 %v1763_v31, 0.0  ;;  %v1766_v61 = vmax.f32 %v1765_v38, 0.0  ;;  %v1767_v48 = vld [vmem:[#allocation32_spill] sm:$0xff]  ;;  %v1769_v25 = vld [vmem:[#allocation33_spill] sm:$0xff] }
  0x60   : > { %446 = vst [vmem:[%s1140_s16 + $0x1b0] sm:$0xff] %v1716_v32  ;;  %447 = vst [vmem:[%s1140_s16 + $0x1b8] sm:$0xff] %v1718_v1  ;;  %v1768_v62 = vmax.f32 %v1767_v48, 0.0  ;;  %v1770_v63 = vmax.f32 %v1769_v25, 0.0  ;;  %v1771_v32 = vld [vmem:[#allocation34_spill] sm:$0xff]  ;;  %v1773_v1 = vld [vmem:[#allocation35_spill] sm:$0xff] }
  0x61   : > { %448 = vst [vmem:[%s1140_s16 + $0x1c0] sm:$0xff] %v1720_v3  ;;  %449 = vst [vmem:[%s1140_s16 + $0x1c8] sm:$0xff] %v1722_v5  ;;  %v1772_v0 = vmax.f32 %v1771_v32, 0.0  ;;  %v1774_v2 = vmax.f32 %v1773_v1, 0.0  ;;  %v1775_v3 = vld [vmem:[#allocation36_spill] sm:$0xff]  ;;  %v1777_v5 = vld [vmem:[#allocation37_spill] sm:$0xff] }
  0x62   : > { %450 = vst [vmem:[%s1140_s16 + $0x1d0] sm:$0xff] %v1724_v10  ;;  %451 = vst [vmem:[%s1140_s16 + $0x1d8] sm:$0xff] %v1726_v12  ;;  %v1776_v4 = vmax.f32 %v1775_v3, 0.0  ;;  %v1778_v9 = vmax.f32 %v1777_v5, 0.0  ;;  %v1779_v10 = vld [vmem:[#allocation38_spill] sm:$0xff]  ;;  %v1781_v12 = vld [vmem:[#allocation39_spill] sm:$0xff] }
  0x63   : > { %452 = vst [vmem:[%s1140_s16 + $0x1e0] sm:$0xff] %v1728_v14  ;;  %453 = vst [vmem:[%s1140_s16 + $0x1e8] sm:$0xff] %v1730_v16  ;;  %v1780_v11 = vmax.f32 %v1779_v10, 0.0  ;;  %v1782_v13 = vmax.f32 %v1781_v12, 0.0  ;;  %v1783_v14 = vld [vmem:[#allocation40_spill] sm:$0xff]  ;;  %v1785_v16 = vld [vmem:[#allocation41_spill] sm:$0xff] }
  0x64   : > { %454 = vst [vmem:[%s1140_s16 + $0x1f0] sm:$0xff] %v1732_v21  ;;  %455 = vst [vmem:[%s1140_s16 + $0x1f8] sm:$0xff] %v1734_v23  ;;  %v1784_v15 = vmax.f32 %v1783_v14, 0.0  ;;  %v1786_v17 = vmax.f32 %v1785_v16, 0.0  ;;  %v1787_v21 = vld [vmem:[#allocation42_spill] sm:$0xff]  ;;  %v1789_v23 = vld [vmem:[#allocation43_spill] sm:$0xff] }
  0x65   : > { %456 = vst [vmem:[%s1140_s16 + $0x200] sm:$0xff] %v1736_v28  ;;  %457 = vst [vmem:[%s1140_s16 + $0x208] sm:$0xff] %v1738_v30  ;;  %v1788_v22 = vmax.f32 %v1787_v21, 0.0  ;;  %v1790_v27 = vmax.f32 %v1789_v23, 0.0  ;;  %v1791_v28 = vld [vmem:[#allocation44_spill] sm:$0xff]  ;;  %v1793_v30 = vld [vmem:[#allocation45_spill] sm:$0xff] }
  0x66   : > { %458 = vst [vmem:[%s1140_s16 + $0x210] sm:$0xff] %v1740_v34  ;;  %459 = vst [vmem:[%s1140_s16 + $0x218] sm:$0xff] %v1742_v39  ;;  %v1792_v29 = vmax.f32 %v1791_v28, 0.0  ;;  %v1794_v33 = vmax.f32 %v1793_v30, 0.0  ;;  %v1795_v34 = vld [vmem:[#allocation46_spill] sm:$0xff]  ;;  %v1797_v39 = vld [vmem:[#allocation47_spill] sm:$0xff] }
  0x67   : > { %460 = vst [vmem:[%s1140_s16 + $0x220] sm:$0xff] %v1744_v41  ;;  %461 = vst [vmem:[%s1140_s16 + $0x228] sm:$0xff] %v1746_v45  ;;  %v1796_v35 = vmax.f32 %v1795_v34, 0.0  ;;  %v1798_v40 = vmax.f32 %v1797_v39, 0.0  ;;  %v1799_v41 = vld [vmem:[#allocation48_spill] sm:$0xff]  ;;  %v1801_v45 = vld [vmem:[#allocation49_spill] sm:$0xff] }
  0x68   : > { %462 = vst [vmem:[%s1140_s16 + $0x230] sm:$0xff] %v1748_v47  ;;  %463 = vst [vmem:[%s1140_s16 + $0x238] sm:$0xff] %v1750_v52  ;;  %v1800_v42 = vmax.f32 %v1799_v41, 0.0  ;;  %v1802_v46 = vmax.f32 %v1801_v45, 0.0  ;;  %v1803_v47 = vld [vmem:[#allocation50_spill] sm:$0xff]  ;;  %v1805_v52 = vld [vmem:[#allocation51_spill] sm:$0xff] }
  0x69   : > { %464 = vst [vmem:[%s1140_s16 + $0x240] sm:$0xff] %v1752_v55  ;;  %465 = vst [vmem:[%s1140_s16 + $0x248] sm:$0xff] %v1754_v56  ;;  %v1804_v51 = vmax.f32 %v1803_v47, 0.0  ;;  %v1806_v53 = vmax.f32 %v1805_v52, 0.0  ;;  %v1807_v55 = vld [vmem:[#allocation52_spill] sm:$0xff]  ;;  %v1809_v56 = vld [vmem:[#allocation53_spill] sm:$0xff] }
  0x6a   : > { %466 = vst [vmem:[%s1140_s16 + $0x250] sm:$0xff] %v1756_v43  ;;  %467 = vst [vmem:[%s1140_s16 + $0x258] sm:$0xff] %v1758_v58  ;;  %v1808_v49 = vmax.f32 %v1807_v55, 0.0  ;;  %v1810_v57 = vmax.f32 %v1809_v56, 0.0  ;;  %v1811_v43 = vmax.f32 %v1100_v7, 0.0  ;;  %v1813_v58 = vmax.f32 %v1812_v50, 0.0 }
  0x6b   : > { %468 = vst [vmem:[%s1140_s16 + $0x260] sm:$0xff] %v1760_v44  ;;  %469 = vst [vmem:[%s1140_s16 + $0x268] sm:$0xff] %v1762_v59  ;;  %v1815_v44 = vmax.f32 %v1814_v37, 0.0  ;;  %v1816_v54 = vld [vmem:[#allocation56_spill] sm:$0xff]  ;;  %v1818_v31 = vld [vmem:[#allocation57_spill] sm:$0xff]  ;;  %v1829_v1 = vmax.f32 %v1146_v19, 0.0 }
  0x6c   : > { %470 = vst [vmem:[%s1140_s16 + $0x270] sm:$0xff] %v1764_v60  ;;  %471 = vst [vmem:[%s1140_s16 + $0x278] sm:$0xff] %v1766_v61  ;;  %v1817_v59 = vmax.f32 %v1816_v54, 0.0  ;;  %v1819_v60 = vmax.f32 %v1818_v31, 0.0  ;;  %v1820_v38 = vld [vmem:[#allocation58_spill] sm:$0xff]  ;;  %v1822_v48 = vld [vmem:[#allocation59_spill] sm:$0xff] }
  0x6d   : > { %472 = vst [vmem:[%s1140_s16 + $0x280] sm:$0xff] %v1768_v62  ;;  %473 = vst [vmem:[%s1140_s16 + $0x288] sm:$0xff] %v1770_v63  ;;  %v1821_v61 = vmax.f32 %v1820_v38, 0.0  ;;  %v1823_v7 = vmax.f32 %v1822_v48, 0.0  ;;  %v1824_v62 = vld [vmem:[#allocation60_spill] sm:$0xff]  ;;  %v1826_v63 = vld [vmem:[#allocation61_spill] sm:$0xff] }
  0x6e   : > { %474 = vst [vmem:[%s1140_s16 + $0x290] sm:$0xff] %v1772_v0  ;;  %475 = vst [vmem:[%s1140_s16 + $0x298] sm:$0xff] %v1774_v2  ;;  %v1825_v25 = vmax.f32 %v1824_v62, 0.0  ;;  %v1827_v32 = vmax.f32 %v1826_v63, 0.0  ;;  %v1828_v0 = vmax.f32 %v1143_v24, 0.0  ;;  %v1830_v2 = vmax.f32 %v1149_v6, 0.0 }
  0x6f   : > { %476 = vst [vmem:[%s1140_s16 + $0x2a0] sm:$0xff] %v1776_v4  ;;  %477 = vst [vmem:[%s1140_s16 + $0x2a8] sm:$0xff] %v1778_v9  ;;  %v391_v3 = vmax.f32 %v1167_v18, 0.0  ;;  %v1831_v4 = vmax.f32 %v1155_v36, 0.0  ;;  %v1832_v5 = vmax.f32 %v1161_v8, 0.0 }
  0x70   : > { %478 = vst [vmem:[%s1140_s16 + $0x2b0] sm:$0xff] %v1780_v11  ;;  %479 = vst [vmem:[%s1140_s16 + $0x2b8] sm:$0xff] %v1782_v13 }
  0x71   : > { %480 = vst [vmem:[%s1140_s16 + $0x2c0] sm:$0xff] %v1784_v15  ;;  %481 = vst [vmem:[%s1140_s16 + $0x2c8] sm:$0xff] %v1786_v17 }
  0x72   : > { %482 = vst [vmem:[%s1140_s16 + $0x2d0] sm:$0xff] %v1788_v22  ;;  %483 = vst [vmem:[%s1140_s16 + $0x2d8] sm:$0xff] %v1790_v27 }
  0x73   : > { %484 = vst [vmem:[%s1140_s16 + $0x2e0] sm:$0xff] %v1792_v29  ;;  %485 = vst [vmem:[%s1140_s16 + $0x2e8] sm:$0xff] %v1794_v33 }
  0x74   : > { %486 = vst [vmem:[%s1140_s16 + $0x2f0] sm:$0xff] %v1796_v35  ;;  %487 = vst [vmem:[%s1140_s16 + $0x2f8] sm:$0xff] %v1798_v40 }
  0x75   : > { %488 = vst [vmem:[%s1140_s16 + $0x300] sm:$0xff] %v1800_v42  ;;  %489 = vst [vmem:[%s1140_s16 + $0x308] sm:$0xff] %v1802_v46 }
  0x76   : > { %490 = vst [vmem:[%s1140_s16 + $0x310] sm:$0xff] %v1804_v51  ;;  %491 = vst [vmem:[%s1140_s16 + $0x318] sm:$0xff] %v1806_v53 }
  0x77   : > { %492 = vst [vmem:[%s1140_s16 + $0x320] sm:$0xff] %v1808_v49  ;;  %493 = vst [vmem:[%s1140_s16 + $0x328] sm:$0xff] %v1810_v57 }
  0x78   : > { %494 = vst [vmem:[%s1140_s16 + $0x330] sm:$0xff] %v1811_v43  ;;  %495 = vst [vmem:[%s1140_s16 + $0x338] sm:$0xff] %v1813_v58 }
  0x79   : > { %496 = vst [vmem:[%s1140_s16 + $0x340] sm:$0xff] %v1815_v44  ;;  %497 = vst [vmem:[%s1140_s16 + $0x348] sm:$0xff] %v1817_v59 }
  0x7a   : > { %498 = vst [vmem:[%s1140_s16 + $0x350] sm:$0xff] %v1819_v60  ;;  %499 = vst [vmem:[%s1140_s16 + $0x358] sm:$0xff] %v1821_v61 }
  0x7b   : > { %500 = vst [vmem:[%s1140_s16 + $0x360] sm:$0xff] %v1823_v7  ;;  %501 = vst [vmem:[%s1140_s16 + $0x368] sm:$0xff] %v1825_v25 }
  0x7c   : > { %502 = vst [vmem:[%s1140_s16 + $0x370] sm:$0xff] %v1827_v32  ;;  %503 = vst [vmem:[%s1140_s16 + $0x378] sm:$0xff] %v1828_v0 }
  0x7d   : > { %504 = vst [vmem:[%s1140_s16 + $0x380] sm:$0xff] %v1829_v1  ;;  %505 = vst [vmem:[%s1140_s16 + $0x388] sm:$0xff] %v1830_v2 }
  0x7e   : > { %506 = vst [vmem:[%s1140_s16 + $0x390] sm:$0xff] %v1831_v4  ;;  %507 = vst [vmem:[%s1140_s16 + $0x398] sm:$0xff] %v389_v20 }
  0x7f   : > { %508 = vst [vmem:[%s1140_s16 + $0x3a0] sm:$0xff] %v1832_v5  ;;  %510 = vst.msk [vmem:[%s1140_s16 + $0x3a8] sm:$0xff] %vm509_vm0, %v391_v3 }
  0x80 PF: > { %s11_s8 = sadd.s32 1, %s654_s8   ;;  %s1833_s6 = smov %s650_s7 }
  0x81   : > { %p8_p5 = scmp.ge.s32.totalorder %s11_s8, 4   ;;  %s1834_s7 = smov %s1836_s9 }
  0x83   :  { %10 = sbr.rel (!%p8_p5) target bundleno = 2 (0x2), region = 54 }

</bundles_post_ra>
